<compile_context>
chip_gen: v7x
topology: tpu7x:2x2x1
jax: 0.10.0
libtpu: 0.0.40
codegen_flags: <defaults>
</compile_context>

<pallas_src>
import math
import functools

import jax
import jax.numpy as jnp
from jax import lax
from jax.experimental import pallas as pl
from jax.experimental.pallas import tpu as pltpu

# Leaves headroom on v7x (64 MiB physical) while raising the v5e/v6e scoped defaults.
_VMEM_LIMIT = 48 * 1024 * 1024


def _divisor_tile(n, unit, cap):
    """Largest divisor of n that is a multiple of `unit` and <= cap; falls back to n."""
    k = min(cap, (n // unit) * unit)
    while k >= unit:
        if n % k == 0:
            return k
        k -= unit
    return n


# ----------------------------------------------------------------------------
# Kernel 1: MHA (+ residual + LayerNorm1), grid = (batch, query tiles)
# ----------------------------------------------------------------------------
def mha_ln_kernel(x_ref, mask_ref,
                  wqkv_ref, bqkv_ref, wo_ref, bo_ref, g_ref, b_ref,
                  o_ref, qkv_ref, ctx_ref,
                  *, n_head, tq, eps, approx_recip):
    S = x_ref.shape[1]
    D = o_ref.shape[2]
    dh = D // n_head
    cdt = qkv_ref.dtype
    qi = pl.program_id(1)

    # Fused QKV projection, computed once per batch element (qi == 0) and parked in
    # a VMEM scratch; per-head slices are loaded on demand (bounded vreg live ranges).
    @pl.when(qi == 0)
    def _():
        x_all = x_ref[0].astype(cdt)                                   # (S, D)
        qkv = jnp.dot(x_all, wqkv_ref[...],
                      preferred_element_type=jnp.float32) + bqkv_ref[...]
        qkv_ref[...] = qkv.astype(cdt)                                 # (S, 3D)

    row0 = pl.multiple_of(qi * tq, tq)
    xq_f32 = x_ref[0, pl.ds(row0, tq), :].astype(jnp.float32)          # (tq, D) residual

    # Additive key-padding bias (0 valid / -1e9 padded), broadcast ONCE before the loop.
    bias = jnp.broadcast_to((mask_ref[0] - 1.0) * jnp.float32(1e9), (tq, S))

    for h in range(n_head):                                            # static, small n_head
        lo, hi = h * dh, (h + 1) * dh
        qh = qkv_ref[pl.ds(row0, tq), lo:hi]                           # (tq, dh) cdt (scale folded in)
        kh = qkv_ref[:, D + lo:D + hi]                                 # (S, dh)  cdt
        vh = qkv_ref[:, 2 * D + lo:2 * D + hi]                         # (S, dh)  cdt

        s = lax.dot_general(qh, kh, (((1,), (1,)), ((), ())),
                            preferred_element_type=jnp.float32)        # (tq, S)
        s = s + bias
        m = jnp.max(s, axis=-1, keepdims=True)
        p = jnp.exp(s - m)
        denom = jnp.sum(p, axis=-1, keepdims=True)
        ctx = jnp.dot(p.astype(cdt), vh, preferred_element_type=jnp.float32)  # (tq, dh)
        ctx = ctx * pl.reciprocal(denom, approx=approx_recip)          # normalise AFTER p@v
        ctx_ref[:, lo:hi] = ctx.astype(cdt)

    # ONE K=D out-projection (keeps the MXU full), then residual + LayerNorm1 epilogue.
    out = xq_f32 + bo_ref[...] + jnp.dot(ctx_ref[...], wo_ref[...],
                                         preferred_element_type=jnp.float32)
    mu = jnp.mean(out, axis=-1, keepdims=True)
    var = jnp.mean((out - mu) ** 2, axis=-1, keepdims=True)
    yn = (out - mu) * lax.rsqrt(var + jnp.float32(eps))
    o_ref[0] = (yn * g_ref[...] + b_ref[...]).astype(o_ref.dtype)


def mha_add_ln(x, pad_mask, p, n_head, *, eps=1e-5, q_tile=None):
    B, S, D = x.shape
    assert D % n_head == 0
    cdt = p["w_qkv"].dtype
    tq = q_tile if q_tile is not None else _divisor_tile(S, 8, 256)
    nq = S // tq

    args = (x, pad_mask, p["w_qkv"], p["b_qkv"], p["wo"], p["bo"],
            p["ln1_g"], p["ln1_b"])

    def const_spec(a):
        nd = a.ndim
        # constant index_map => block fetched once and revisited every grid step
        return pl.BlockSpec(a.shape, lambda b, q, _nd=nd: (0,) * _nd)

    in_specs = [pl.BlockSpec((1, S, D), lambda b, q: (b, 0, 0)),
                pl.BlockSpec((1, 1, S), lambda b, q: (b, 0, 0))]
    in_specs += [const_spec(a) for a in args[2:]]

    return pl.pallas_call(
        functools.partial(mha_ln_kernel, n_head=n_head, tq=tq, eps=eps,
                          approx_recip=(p["w_qkv"].dtype != jnp.float32)),
        out_shape=jax.ShapeDtypeStruct((B, S, D), x.dtype),
        grid=(B, nq),
        in_specs=in_specs,
        out_specs=pl.BlockSpec((1, tq, D), lambda b, q: (b, q, 0)),
        scratch_shapes=[pltpu.VMEM((S, 3 * D), cdt),    # fused QKV, reused across q tiles
                        pltpu.VMEM((tq, D), cdt)],      # per-tile head contexts
        compiler_params=pltpu.CompilerParams(
            dimension_semantics=("parallel", "arbitrary"),
            vmem_limit_bytes=_VMEM_LIMIT),
    )(*args)


# ----------------------------------------------------------------------------
# Kernel 2: FFN (+ residual + LayerNorm2), grid = (row tiles, hidden tiles)
# ----------------------------------------------------------------------------
def ffn_ln_kernel(x_ref, w1_ref, b1_ref, w2_ref, b2_ref, g_ref, b_ref,
                  o_ref, acc_ref, *, eps):
    f = pl.program_id(1)
    cdt = w1_ref.dtype

    # Init the fp32 accumulator with residual + final bias on the first hidden block.
    @pl.when(f == 0)
    def _():
        acc_ref[...] = x_ref[...].astype(jnp.float32) + b2_ref[...]

    h = jnp.dot(x_ref[...].astype(cdt), w1_ref[...],
                preferred_element_type=jnp.float32) + b1_ref[...]
    h = jnp.maximum(h, 0.0)                                  # ReLU (dropout = identity)
    acc_ref[...] += jnp.dot(h.astype(cdt), w2_ref[...],
                            preferred_element_type=jnp.float32)

    # Fused residual + LayerNorm2 epilogue on the last hidden block.
    @pl.when(f == pl.num_programs(1) - 1)
    def _():
        y = acc_ref[...]
        mu = jnp.mean(y, axis=-1, keepdims=True)
        var = jnp.mean((y - mu) ** 2, axis=-1, keepdims=True)
        yn = (y - mu) * lax.rsqrt(var + jnp.float32(eps))
        o_ref[...] = (yn * g_ref[...] + b_ref[...]).astype(o_ref.dtype)


def ffn_add_ln(x2, p, *, eps=1e-5, row_tile=None, hidden_tile=None):
    N, D = x2.shape
    F = p["w1"].shape[1]
    tr = row_tile if row_tile is not None else _divisor_tile(N, 8, 256)
    tf = hidden_tile if hidden_tile is not None else _divisor_tile(F, 128, 512)
    nr, nf = N // tr, F // tf

    args = (x2, p["w1"], p["b1"], p["w2"], p["b2"], p["ln2_g"], p["ln2_b"])

    in_specs = [
        pl.BlockSpec((tr, D), lambda i, f: (i, 0)),       # rows: resident across f
        pl.BlockSpec((D, tf), lambda i, f: (0, f)),       # w1: streamed over hidden dim
        pl.BlockSpec((1, tf), lambda i, f: (0, f)),
        pl.BlockSpec((tf, D), lambda i, f: (f, 0)),       # w2: streamed over hidden dim
        pl.BlockSpec((1, D), lambda i, f: (0, 0)),
        pl.BlockSpec((1, D), lambda i, f: (0, 0)),
        pl.BlockSpec((1, D), lambda i, f: (0, 0)),
    ]

    return pl.pallas_call(
        functools.partial(ffn_ln_kernel, eps=eps),
        out_shape=jax.ShapeDtypeStruct((N, D), x2.dtype),
        grid=(nr, nf),
        in_specs=in_specs,
        out_specs=pl.BlockSpec((tr, D), lambda i, f: (i, 0)),
        scratch_shapes=[pltpu.VMEM((tr, D), jnp.float32)],
        compiler_params=pltpu.CompilerParams(
            dimension_semantics=("parallel", "arbitrary"),
            vmem_limit_bytes=_VMEM_LIMIT),
    )(*args)


# ----------------------------------------------------------------------------
# Parameter prep (one-time) + EncoderLayer forward
# ----------------------------------------------------------------------------
def prepare_params(p, n_head, compute_dtype=jnp.bfloat16):
    """Fuse QKV weights, fold the softmax scale into the Q columns, and cast matmul
    operands to the compute dtype ONCE.  Biases / LayerNorm params stay fp32."""
    D = p["wq"].shape[0]
    scale = jnp.float32(1.0 / math.sqrt(D // n_head))
    w_qkv = jnp.concatenate([p["wq"] * scale, p["wk"], p["wv"]], axis=1)
    b_qkv = jnp.concatenate([p["bq"] * scale, p["bk"], p["bv"]], axis=1)
    f32 = jnp.float32
    return {
        "w_qkv": w_qkv.astype(compute_dtype), "b_qkv": b_qkv.astype(f32),
        "wo": p["wo"].astype(compute_dtype), "bo": p["bo"].astype(f32),
        "ln1_g": p["ln1_g"].astype(f32), "ln1_b": p["ln1_b"].astype(f32),
        "w1": p["w1"].astype(compute_dtype), "b1": p["b1"].astype(f32),
        "w2": p["w2"].astype(compute_dtype), "b2": p["b2"].astype(f32),
        "ln2_g": p["ln2_g"].astype(f32), "ln2_b": p["ln2_b"].astype(f32),
    }


def encoder_layer_forward(x, pad_mask, prepared, n_head):
    B, S, D = x.shape
    x1 = mha_add_ln(x, pad_mask, prepared, n_head)
    x2 = ffn_add_ln(x1.reshape(B * S, D), prepared)
    return x2.reshape(B, S, D)


def init_params(key, dim_model, ffn_hidden):
    ks = jax.random.split(key, 6)
    s = 0.02
    return {
        "wq": s * jax.random.normal(ks[0], (dim_model, dim_model), jnp.float32),
        "bq": jnp.zeros((1, dim_model), jnp.float32),
        "wk": s * jax.random.normal(ks[1], (dim_model, dim_model), jnp.float32),
        "bk": jnp.zeros((1, dim_model), jnp.float32),
        "wv": s * jax.random.normal(ks[2], (dim_model, dim_model), jnp.float32),
        "bv": jnp.zeros((1, dim_model), jnp.float32),
        "wo": s * jax.random.normal(ks[3], (dim_model, dim_model), jnp.float32),
        "bo": jnp.zeros((1, dim_model), jnp.float32),
        "ln1_g": jnp.ones((1, dim_model), jnp.float32),
        "ln1_b": jnp.zeros((1, dim_model), jnp.float32),
        "w1": s * jax.random.normal(ks[4], (dim_model, ffn_hidden), jnp.float32),
        "b1": jnp.zeros((1, ffn_hidden), jnp.float32),
        "w2": s * jax.random.normal(ks[5], (ffn_hidden, dim_model), jnp.float32),
        "b2": jnp.zeros((1, dim_model), jnp.float32),
        "ln2_g": jnp.ones((1, dim_model), jnp.float32),
        "ln2_b": jnp.zeros((1, dim_model), jnp.float32),
    }


# ----------------------------------------------------------------------------
# Pure-JAX reference (correctness check)
# ----------------------------------------------------------------------------
def reference_forward(x, pad_mask, p, n_head):
    B, S, D = x.shape
    dh = D // n_head

    def ln(y, g, b, eps=1e-5):
        mu = y.mean(-1, keepdims=True)
        var = ((y - mu) ** 2).mean(-1, keepdims=True)
        return (y - mu) / jnp.sqrt(var + eps) * g + b

    q = x @ p["wq"] + p["bq"]
    k = x @ p["wk"] + p["bk"]
    v = x @ p["wv"] + p["bv"]
    q = q.reshape(B, S, n_head, dh).transpose(0, 2, 1, 3)
    k = k.reshape(B, S, n_head, dh).transpose(0, 2, 1, 3)
    v = v.reshape(B, S, n_head, dh).transpose(0, 2, 1, 3)
    s = jnp.einsum("bhqd,bhkd->bhqk", q, k) / math.sqrt(dh)
    s = jnp.where(pad_mask[:, None, :, :] > 0, s, -1e9)
    a = jax.nn.softmax(s, axis=-1)
    o = jnp.einsum("bhqk,bhkd->bhqd", a, v).transpose(0, 2, 1, 3).reshape(B, S, D)
    o = o @ p["wo"] + p["bo"]
    x1 = ln(o + x, p["ln1_g"], p["ln1_b"])
    h = jax.nn.relu(x1 @ p["w1"] + p["b1"]) @ p["w2"] + p["b2"]
    return ln(h + x1, p["ln2_g"], p["ln2_b"])


if __name__ == "__main__":
    B, S, D, H, F = 2, 8, 32, 4, 64
    key = jax.random.PRNGKey(0)
    kx, kp = jax.random.split(key)

    x = jax.random.normal(kx, (B, S, D), jnp.float32)
    # pad mask: batch 0 fully valid, batch 1 has the last 2 key positions padded
    pad_mask = jnp.ones((B, 1, S), jnp.float32)
    pad_mask = pad_mask.at[1, 0, S - 2:].set(0.0)

    params = init_params(kp, D, F)
    ref = reference_forward(x, pad_mask, params, n_head=H)

    # fp32 path (exact reciprocal / softmax / LN): must match the reference tightly.
    out = encoder_layer_forward(x, pad_mask,
                                prepare_params(params, H, jnp.float32), n_head=H)
    out = jax.block_until_ready(out)
    assert out.shape == (B, S, D)
    assert jnp.allclose(out, ref, atol=1e-4, rtol=1e-4), "fp32 mismatch vs reference"

    # bf16 matmul-operand path (default; fp32 accumulation / softmax / LN): looser check.
    out_bf16 = encoder_layer_forward(x, pad_mask,
                                     prepare_params(params, H), n_head=H)
    out_bf16 = jax.block_until_ready(out_bf16)
    assert jnp.allclose(out_bf16, ref, atol=8e-2, rtol=8e-2), "bf16 mismatch vs reference"

    print("KERNEL_OK")
</pallas_src>

<mosaic_0001>
module attributes {stable_mosaic.version = 11 : i64} {
  func.func @mha_ln_kernel(%arg0: i32, %arg1: i32, %arg2: memref<1x8x32xf32, #tpu.memory_space<vmem>>, %arg3: memref<1x1x8xf32, #tpu.memory_space<vmem>>, %arg4: memref<32x96xf32, #tpu.memory_space<vmem>>, %arg5: memref<1x96xf32, #tpu.memory_space<vmem>>, %arg6: memref<32x32xf32, #tpu.memory_space<vmem>>, %arg7: memref<1x32xf32, #tpu.memory_space<vmem>>, %arg8: memref<1x32xf32, #tpu.memory_space<vmem>>, %arg9: memref<1x32xf32, #tpu.memory_space<vmem>>, %arg10: memref<1x8x32xf32, #tpu.memory_space<vmem>>, %arg11: memref<8x96xf32, #tpu.memory_space<vmem>>, %arg12: memref<8x32xf32, #tpu.memory_space<vmem>>) attributes {dimension_semantics = [#tpu.dimension_semantics<parallel>, #tpu.dimension_semantics<arbitrary>], iteration_bounds = array<i64: 2, 1>, scalar_prefetch = 0 : i64, scratch_operands = 2 : i64, tpu.core_type = #tpu.core_type<tc>, window_params = [{transform_indices = @transform_0, window_bounds = array<i64: 1, 8, 32>}, {transform_indices = @transform_1, window_bounds = array<i64: 1, 1, 8>}, {pipeline_mode = #tpu.pipeline_mode<synchronous>, transform_indices = @transform_2, window_bounds = array<i64: 32, 96>}, {pipeline_mode = #tpu.pipeline_mode<synchronous>, transform_indices = @transform_3, window_bounds = array<i64: 1, 96>}, {pipeline_mode = #tpu.pipeline_mode<synchronous>, transform_indices = @transform_4, window_bounds = array<i64: 32, 32>}, {pipeline_mode = #tpu.pipeline_mode<synchronous>, transform_indices = @transform_5, window_bounds = array<i64: 1, 32>}, {pipeline_mode = #tpu.pipeline_mode<synchronous>, transform_indices = @transform_6, window_bounds = array<i64: 1, 32>}, {pipeline_mode = #tpu.pipeline_mode<synchronous>, transform_indices = @transform_7, window_bounds = array<i64: 1, 32>}, {transform_indices = @transform_8, window_bounds = array<i64: 1, 8, 32>}]} {
    %c0_i32 = arith.constant 0 : i32
    %0 = arith.cmpi eq, %arg1, %c0_i32 : i32
    %1 = arith.extui %0 : i1 to i32
    %c0_i32_0 = arith.constant 0 : i32
    %2 = arith.cmpi ne, %1, %c0_i32_0 : i32
    scf.if %2 {
      %c0_58 = arith.constant 0 : index
      %c0_59 = arith.constant 0 : index
      %c0_60 = arith.constant 0 : index
      %122 = vector.load %arg2[%c0_58, %c0_59, %c0_60] : memref<1x8x32xf32, #tpu.memory_space<vmem>>, vector<1x8x32xf32>
      %123 = vector.shape_cast %122 : vector<1x8x32xf32> to vector<8x32xf32>
      %c0_61 = arith.constant 0 : index
      %c0_62 = arith.constant 0 : index
      %124 = vector.load %arg4[%c0_61, %c0_62] : memref<32x96xf32, #tpu.memory_space<vmem>>, vector<32x96xf32>
      %cst_63 = arith.constant dense<0.000000e+00> : vector<8x96xf32>
      %125 = tpu.matmul %123, %124, %cst_63 {dimension_numbers = #tpu.dot_dimension_numbers<[1], [0], [0], [1], [0, 0, 1, 1], [], []>} : vector<8x32xf32>, vector<32x96xf32>, vector<8x96xf32> -> vector<8x96xf32>
      %c0_64 = arith.constant 0 : index
      %c0_65 = arith.constant 0 : index
      %126 = vector.load %arg5[%c0_64, %c0_65] : memref<1x96xf32, #tpu.memory_space<vmem>>, vector<1x96xf32>
      %127 = vector.broadcast %126 : vector<1x96xf32> to vector<8x96xf32>
      %128 = arith.addf %125, %127 : vector<8x96xf32>
      %c0_66 = arith.constant 0 : index
      %c0_67 = arith.constant 0 : index
      %129 = vector.load %arg11[%c0_66, %c0_67] : memref<8x96xf32, #tpu.memory_space<vmem>>, vector<8x96xf32>
      tpu.vector_store %arg11[%c0_66, %c0_67], %128 {strides = array<i32>} : memref<8x96xf32, #tpu.memory_space<vmem>>, vector<8x96xf32>,
    } else {
    }
    %c8_i32 = arith.constant 8 : i32
    %3 = arith.muli %arg1, %c8_i32 : i32
    %4 = tpu.assume_multiple %3, 8 : i32
    %c0 = arith.constant 0 : index
    %5 = arith.index_cast %4 : i32 to index
    %c0_1 = arith.constant 0 : index
    %6 = vector.load %arg2[%c0, %5, %c0_1] : memref<1x8x32xf32, #tpu.memory_space<vmem>>, vector<1x8x32xf32>
    %7 = vector.shape_cast %6 : vector<1x8x32xf32> to vector<8x32xf32>
    %c0_2 = arith.constant 0 : index
    %c0_3 = arith.constant 0 : index
    %c0_4 = arith.constant 0 : index
    %8 = vector.load %arg3[%c0_2, %c0_3, %c0_4] : memref<1x1x8xf32, #tpu.memory_space<vmem>>, vector<1x1x8xf32>
    %9 = vector.shape_cast %8 : vector<1x1x8xf32> to vector<1x8xf32>
    %cst = arith.constant 1.000000e+00 : f32
    %10 = vector.broadcast %cst : f32 to vector<1x8xf32>
    %11 = arith.subf %9, %10 : vector<1x8xf32>
    %cst_5 = arith.constant 1.000000e+09 : f32
    %12 = vector.broadcast %cst_5 : f32 to vector<1x8xf32>
    %13 = arith.mulf %11, %12 : vector<1x8xf32>
    %14 = vector.shape_cast %13 : vector<1x8xf32> to vector<1x8xf32>
    %15 = vector.broadcast %14 : vector<1x8xf32> to vector<8x8xf32>
    %16 = arith.index_cast %4 : i32 to index
    %c0_6 = arith.constant 0 : index
    %17 = vector.load %arg11[%16, %c0_6] : memref<8x96xf32, #tpu.memory_space<vmem>>, vector<8x8xf32>
    %c0_7 = arith.constant 0 : index
    %c32 = arith.constant 32 : index
    %18 = vector.load %arg11[%c0_7, %c32] : memref<8x96xf32, #tpu.memory_space<vmem>>, vector<8x8xf32>
    %c0_8 = arith.constant 0 : index
    %c64 = arith.constant 64 : index
    %19 = vector.load %arg11[%c0_8, %c64] : memref<8x96xf32, #tpu.memory_space<vmem>>, vector<8x8xf32>
    %cst_9 = arith.constant dense<0.000000e+00> : vector<8x8xf32>
    %20 = tpu.matmul %17, %18, %cst_9 {dimension_numbers = #tpu.dot_dimension_numbers<[1], [1], [0], [0], [0, 0, 1, 0], [], []>} : vector<8x8xf32>, vector<8x8xf32>, vector<8x8xf32> -> vector<8x8xf32>
    %21 = arith.addf %20, %15 : vector<8x8xf32>
    %cst_10 = arith.constant dense<0xFF800000> : vector<8xf32>
    %22 = vector.multi_reduction <maximumf>, %21, %cst_10 [1] : vector<8x8xf32> to vector<8xf32>
    %23 = vector.shape_cast %22 : vector<8xf32> to vector<8x1xf32>
    %24 = vector.broadcast %23 : vector<8x1xf32> to vector<8x8xf32>
    %25 = arith.subf %21, %24 : vector<8x8xf32>
    %26 = math.exp %25 : vector<8x8xf32>
    %cst_11 = arith.constant dense<0.000000e+00> : vector<8xf32>
    %27 = vector.multi_reduction <add>, %26, %cst_11 [1] : vector<8x8xf32> to vector<8xf32>
    %28 = vector.shape_cast %27 : vector<8xf32> to vector<8x1xf32>
    %cst_12 = arith.constant dense<0.000000e+00> : vector<8x8xf32>
    %29 = tpu.matmul %26, %19, %cst_12 {dimension_numbers = #tpu.dot_dimension_numbers<[1], [0], [0], [1], [0, 0, 1, 1], [], []>} : vector<8x8xf32>, vector<8x8xf32>, vector<8x8xf32> -> vector<8x8xf32>
    %30 = tpu.reciprocal %28 : vector<8x1xf32> -> vector<8x1xf32>
    %31 = vector.broadcast %30 : vector<8x1xf32> to vector<8x8xf32>
    %32 = arith.mulf %29, %31 : vector<8x8xf32>
    %c0_13 = arith.constant 0 : index
    %c0_14 = arith.constant 0 : index
    %33 = vector.load %arg12[%c0_13, %c0_14] : memref<8x32xf32, #tpu.memory_space<vmem>>, vector<8x8xf32>
    tpu.vector_store %arg12[%c0_13, %c0_14], %32 {strides = array<i32>} : memref<8x32xf32, #tpu.memory_space<vmem>>, vector<8x8xf32>,
    %34 = arith.index_cast %4 : i32 to index
    %c8 = arith.constant 8 : index
    %35 = vector.load %arg11[%34, %c8] : memref<8x96xf32, #tpu.memory_space<vmem>>, vector<8x8xf32>
    %c0_15 = arith.constant 0 : index
    %c40 = arith.constant 40 : index
    %36 = vector.load %arg11[%c0_15, %c40] : memref<8x96xf32, #tpu.memory_space<vmem>>, vector<8x8xf32>
    %c0_16 = arith.constant 0 : index
    %c72 = arith.constant 72 : index
    %37 = vector.load %arg11[%c0_16, %c72] : memref<8x96xf32, #tpu.memory_space<vmem>>, vector<8x8xf32>
    %cst_17 = arith.constant dense<0.000000e+00> : vector<8x8xf32>
    %38 = tpu.matmul %35, %36, %cst_17 {dimension_numbers = #tpu.dot_dimension_numbers<[1], [1], [0], [0], [0, 0, 1, 0], [], []>} : vector<8x8xf32>, vector<8x8xf32>, vector<8x8xf32> -> vector<8x8xf32>
    %39 = arith.addf %38, %15 : vector<8x8xf32>
    %cst_18 = arith.constant dense<0xFF800000> : vector<8xf32>
    %40 = vector.multi_reduction <maximumf>, %39, %cst_18 [1] : vector<8x8xf32> to vector<8xf32>
    %41 = vector.shape_cast %40 : vector<8xf32> to vector<8x1xf32>
    %42 = vector.broadcast %41 : vector<8x1xf32> to vector<8x8xf32>
    %43 = arith.subf %39, %42 : vector<8x8xf32>
    %44 = math.exp %43 : vector<8x8xf32>
    %cst_19 = arith.constant dense<0.000000e+00> : vector<8xf32>
    %45 = vector.multi_reduction <add>, %44, %cst_19 [1] : vector<8x8xf32> to vector<8xf32>
    %46 = vector.shape_cast %45 : vector<8xf32> to vector<8x1xf32>
    %cst_20 = arith.constant dense<0.000000e+00> : vector<8x8xf32>
    %47 = tpu.matmul %44, %37, %cst_20 {dimension_numbers = #tpu.dot_dimension_numbers<[1], [0], [0], [1], [0, 0, 1, 1], [], []>} : vector<8x8xf32>, vector<8x8xf32>, vector<8x8xf32> -> vector<8x8xf32>
    %48 = tpu.reciprocal %46 : vector<8x1xf32> -> vector<8x1xf32>
    %49 = vector.broadcast %48 : vector<8x1xf32> to vector<8x8xf32>
    %50 = arith.mulf %47, %49 : vector<8x8xf32>
    %c0_21 = arith.constant 0 : index
    %c8_22 = arith.constant 8 : index
    %51 = vector.load %arg12[%c0_21, %c8_22] : memref<8x32xf32, #tpu.memory_space<vmem>>, vector<8x8xf32>
    tpu.vector_store %arg12[%c0_21, %c8_22], %50 {strides = array<i32>} : memref<8x32xf32, #tpu.memory_space<vmem>>, vector<8x8xf32>,
    %52 = arith.index_cast %4 : i32 to index
    %c16 = arith.constant 16 : index
    %53 = vector.load %arg11[%52, %c16] : memref<8x96xf32, #tpu.memory_space<vmem>>, vector<8x8xf32>
    %c0_23 = arith.constant 0 : index
    %c48 = arith.constant 48 : index
    %54 = vector.load %arg11[%c0_23, %c48] : memref<8x96xf32, #tpu.memory_space<vmem>>, vector<8x8xf32>
    %c0_24 = arith.constant 0 : index
    %c80 = arith.constant 80 : index
    %55 = vector.load %arg11[%c0_24, %c80] : memref<8x96xf32, #tpu.memory_space<vmem>>, vector<8x8xf32>
    %cst_25 = arith.constant dense<0.000000e+00> : vector<8x8xf32>
    %56 = tpu.matmul %53, %54, %cst_25 {dimension_numbers = #tpu.dot_dimension_numbers<[1], [1], [0], [0], [0, 0, 1, 0], [], []>} : vector<8x8xf32>, vector<8x8xf32>, vector<8x8xf32> -> vector<8x8xf32>
    %57 = arith.addf %56, %15 : vector<8x8xf32>
    %cst_26 = arith.constant dense<0xFF800000> : vector<8xf32>
    %58 = vector.multi_reduction <maximumf>, %57, %cst_26 [1] : vector<8x8xf32> to vector<8xf32>
    %59 = vector.shape_cast %58 : vector<8xf32> to vector<8x1xf32>
    %60 = vector.broadcast %59 : vector<8x1xf32> to vector<8x8xf32>
    %61 = arith.subf %57, %60 : vector<8x8xf32>
    %62 = math.exp %61 : vector<8x8xf32>
    %cst_27 = arith.constant dense<0.000000e+00> : vector<8xf32>
    %63 = vector.multi_reduction <add>, %62, %cst_27 [1] : vector<8x8xf32> to vector<8xf32>
    %64 = vector.shape_cast %63 : vector<8xf32> to vector<8x1xf32>
    %cst_28 = arith.constant dense<0.000000e+00> : vector<8x8xf32>
    %65 = tpu.matmul %62, %55, %cst_28 {dimension_numbers = #tpu.dot_dimension_numbers<[1], [0], [0], [1], [0, 0, 1, 1], [], []>} : vector<8x8xf32>, vector<8x8xf32>, vector<8x8xf32> -> vector<8x8xf32>
    %66 = tpu.reciprocal %64 : vector<8x1xf32> -> vector<8x1xf32>
    %67 = vector.broadcast %66 : vector<8x1xf32> to vector<8x8xf32>
    %68 = arith.mulf %65, %67 : vector<8x8xf32>
    %c0_29 = arith.constant 0 : index
    %c16_30 = arith.constant 16 : index
    %69 = vector.load %arg12[%c0_29, %c16_30] : memref<8x32xf32, #tpu.memory_space<vmem>>, vector<8x8xf32>
    tpu.vector_store %arg12[%c0_29, %c16_30], %68 {strides = array<i32>} : memref<8x32xf32, #tpu.memory_space<vmem>>, vector<8x8xf32>,
    %70 = arith.index_cast %4 : i32 to index
    %c24 = arith.constant 24 : index
    %71 = vector.load %arg11[%70, %c24] : memref<8x96xf32, #tpu.memory_space<vmem>>, vector<8x8xf32>
    %c0_31 = arith.constant 0 : index
    %c56 = arith.constant 56 : index
    %72 = vector.load %arg11[%c0_31, %c56] : memref<8x96xf32, #tpu.memory_space<vmem>>, vector<8x8xf32>
    %c0_32 = arith.constant 0 : index
    %c88 = arith.constant 88 : index
    %73 = vector.load %arg11[%c0_32, %c88] : memref<8x96xf32, #tpu.memory_space<vmem>>, vector<8x8xf32>
    %cst_33 = arith.constant dense<0.000000e+00> : vector<8x8xf32>
    %74 = tpu.matmul %71, %72, %cst_33 {dimension_numbers = #tpu.dot_dimension_numbers<[1], [1], [0], [0], [0, 0, 1, 0], [], []>} : vector<8x8xf32>, vector<8x8xf32>, vector<8x8xf32> -> vector<8x8xf32>
    %75 = arith.addf %74, %15 : vector<8x8xf32>
    %cst_34 = arith.constant dense<0xFF800000> : vector<8xf32>
    %76 = vector.multi_reduction <maximumf>, %75, %cst_34 [1] : vector<8x8xf32> to vector<8xf32>
    %77 = vector.shape_cast %76 : vector<8xf32> to vector<8x1xf32>
    %78 = vector.broadcast %77 : vector<8x1xf32> to vector<8x8xf32>
    %79 = arith.subf %75, %78 : vector<8x8xf32>
    %80 = math.exp %79 : vector<8x8xf32>
    %cst_35 = arith.constant dense<0.000000e+00> : vector<8xf32>
    %81 = vector.multi_reduction <add>, %80, %cst_35 [1] : vector<8x8xf32> to vector<8xf32>
    %82 = vector.shape_cast %81 : vector<8xf32> to vector<8x1xf32>
    %cst_36 = arith.constant dense<0.000000e+00> : vector<8x8xf32>
    %83 = tpu.matmul %80, %73, %cst_36 {dimension_numbers = #tpu.dot_dimension_numbers<[1], [0], [0], [1], [0, 0, 1, 1], [], []>} : vector<8x8xf32>, vector<8x8xf32>, vector<8x8xf32> -> vector<8x8xf32>
    %84 = tpu.reciprocal %82 : vector<8x1xf32> -> vector<8x1xf32>
    %85 = vector.broadcast %84 : vector<8x1xf32> to vector<8x8xf32>
    %86 = arith.mulf %83, %85 : vector<8x8xf32>
    %c0_37 = arith.constant 0 : index
    %c24_38 = arith.constant 24 : index
    %87 = vector.load %arg12[%c0_37, %c24_38] : memref<8x32xf32, #tpu.memory_space<vmem>>, vector<8x8xf32>
    tpu.vector_store %arg12[%c0_37, %c24_38], %86 {strides = array<i32>} : memref<8x32xf32, #tpu.memory_space<vmem>>, vector<8x8xf32>,
    %c0_39 = arith.constant 0 : index
    %c0_40 = arith.constant 0 : index
    %88 = vector.load %arg7[%c0_39, %c0_40] : memref<1x32xf32, #tpu.memory_space<vmem>>, vector<1x32xf32>
    %89 = vector.broadcast %88 : vector<1x32xf32> to vector<8x32xf32>
    %90 = arith.addf %7, %89 : vector<8x32xf32>
    %c0_41 = arith.constant 0 : index
    %c0_42 = arith.constant 0 : index
    %91 = vector.load %arg12[%c0_41, %c0_42] : memref<8x32xf32, #tpu.memory_space<vmem>>, vector<8x32xf32>
    %c0_43 = arith.constant 0 : index
    %c0_44 = arith.constant 0 : index
    %92 = vector.load %arg6[%c0_43, %c0_44] : memref<32x32xf32, #tpu.memory_space<vmem>>, vector<32x32xf32>
    %cst_45 = arith.constant dense<0.000000e+00> : vector<8x32xf32>
    %93 = tpu.matmul %91, %92, %cst_45 {dimension_numbers = #tpu.dot_dimension_numbers<[1], [0], [0], [1], [0, 0, 1, 1], [], []>} : vector<8x32xf32>, vector<32x32xf32>, vector<8x32xf32> -> vector<8x32xf32>
    %94 = arith.addf %90, %93 : vector<8x32xf32>
    %cst_46 = arith.constant dense<0.000000e+00> : vector<8xf32>
    %95 = vector.multi_reduction <add>, %94, %cst_46 [1] : vector<8x32xf32> to vector<8xf32>
    %96 = vector.shape_cast %95 : vector<8xf32> to vector<8x1xf32>
    %cst_47 = arith.constant 3.200000e+01 : f32
    %97 = vector.broadcast %cst_47 : f32 to vector<8x1xf32>
    %98 = arith.divf %96, %97 : vector<8x1xf32>
    %99 = vector.broadcast %98 : vector<8x1xf32> to vector<8x32xf32>
    %100 = arith.subf %94, %99 : vector<8x32xf32>
    %101 = arith.mulf %100, %100 : vector<8x32xf32>
    %cst_48 = arith.constant dense<0.000000e+00> : vector<8xf32>
    %102 = vector.multi_reduction <add>, %101, %cst_48 [1] : vector<8x32xf32> to vector<8xf32>
    %103 = vector.shape_cast %102 : vector<8xf32> to vector<8x1xf32>
    %cst_49 = arith.constant 3.200000e+01 : f32
    %104 = vector.broadcast %cst_49 : f32 to vector<8x1xf32>
    %105 = arith.divf %103, %104 : vector<8x1xf32>
    %106 = vector.broadcast %98 : vector<8x1xf32> to vector<8x32xf32>
    %107 = arith.subf %94, %106 : vector<8x32xf32>
    %cst_50 = arith.constant 9.99999974E-6 : f32
    %108 = vector.broadcast %cst_50 : f32 to vector<8x1xf32>
    %109 = arith.addf %105, %108 : vector<8x1xf32>
    %110 = math.rsqrt %109 : vector<8x1xf32>
    %111 = vector.broadcast %110 : vector<8x1xf32> to vector<8x32xf32>
    %112 = arith.mulf %107, %111 : vector<8x32xf32>
    %c0_51 = arith.constant 0 : index
    %c0_52 = arith.constant 0 : index
    %113 = vector.load %arg8[%c0_51, %c0_52] : memref<1x32xf32, #tpu.memory_space<vmem>>, vector<1x32xf32>
    %114 = vector.broadcast %113 : vector<1x32xf32> to vector<8x32xf32>
    %115 = arith.mulf %112, %114 : vector<8x32xf32>
    %c0_53 = arith.constant 0 : index
    %c0_54 = arith.constant 0 : index
    %116 = vector.load %arg9[%c0_53, %c0_54] : memref<1x32xf32, #tpu.memory_space<vmem>>, vector<1x32xf32>
    %117 = vector.broadcast %116 : vector<1x32xf32> to vector<8x32xf32>
    %118 = arith.addf %115, %117 : vector<8x32xf32>
    %c0_55 = arith.constant 0 : index
    %c0_56 = arith.constant 0 : index
    %c0_57 = arith.constant 0 : index
    %119 = vector.load %arg10[%c0_55, %c0_56, %c0_57] : memref<1x8x32xf32, #tpu.memory_space<vmem>>, vector<1x8x32xf32>
    %120 = vector.shape_cast %119 : vector<1x8x32xf32> to vector<8x32xf32>
    %121 = vector.shape_cast %118 : vector<8x32xf32> to vector<1x8x32xf32>
    tpu.vector_store %arg10[%c0_55, %c0_56, %c0_57], %121 {strides = array<i32>} : memref<1x8x32xf32, #tpu.memory_space<vmem>>, vector<1x8x32xf32>,
    return
  }
  func.func @transform_0(%arg0: i32, %arg1: i32) -> (i32, i32, i32) {
    %c0_i32 = arith.constant 0 : i32
    %c0_i32_0 = arith.constant 0 : i32
    %c0_i32_1 = arith.constant 0 : i32
    return %arg0, %c0_i32, %c0_i32_0 : i32, i32, i32
  }
  func.func @transform_1(%arg0: i32, %arg1: i32) -> (i32, i32, i32) {
    %c0_i32 = arith.constant 0 : i32
    %c0_i32_0 = arith.constant 0 : i32
    %c0_i32_1 = arith.constant 0 : i32
    return %arg0, %c0_i32, %c0_i32_0 : i32, i32, i32
  }
  func.func @transform_2(%arg0: i32, %arg1: i32) -> (i32, i32) {
    %c0_i32 = arith.constant 0 : i32
    %c0_i32_0 = arith.constant 0 : i32
    %c0_i32_1 = arith.constant 0 : i32
    return %c0_i32, %c0_i32_0 : i32, i32
  }
  func.func @transform_3(%arg0: i32, %arg1: i32) -> (i32, i32) {
    %c0_i32 = arith.constant 0 : i32
    %c0_i32_0 = arith.constant 0 : i32
    %c0_i32_1 = arith.constant 0 : i32
    return %c0_i32, %c0_i32_0 : i32, i32
  }
  func.func @transform_4(%arg0: i32, %arg1: i32) -> (i32, i32) {
    %c0_i32 = arith.constant 0 : i32
    %c0_i32_0 = arith.constant 0 : i32
    %c0_i32_1 = arith.constant 0 : i32
    return %c0_i32, %c0_i32_0 : i32, i32
  }
  func.func @transform_5(%arg0: i32, %arg1: i32) -> (i32, i32) {
    %c0_i32 = arith.constant 0 : i32
    %c0_i32_0 = arith.constant 0 : i32
    %c0_i32_1 = arith.constant 0 : i32
    return %c0_i32, %c0_i32_0 : i32, i32
  }
  func.func @transform_6(%arg0: i32, %arg1: i32) -> (i32, i32) {
    %c0_i32 = arith.constant 0 : i32
    %c0_i32_0 = arith.constant 0 : i32
    %c0_i32_1 = arith.constant 0 : i32
    return %c0_i32, %c0_i32_0 : i32, i32
  }
  func.func @transform_7(%arg0: i32, %arg1: i32) -> (i32, i32) {
    %c0_i32 = arith.constant 0 : i32
    %c0_i32_0 = arith.constant 0 : i32
    %c0_i32_1 = arith.constant 0 : i32
    return %c0_i32, %c0_i32_0 : i32, i32
  }
  func.func @transform_8(%arg0: i32, %arg1: i32) -> (i32, i32, i32) {
    %c0_i32 = arith.constant 0 : i32
    %c0_i32_0 = arith.constant 0 : i32
    return %arg0, %arg1, %c0_i32 : i32, i32, i32
  }
}

</mosaic_0001>

<bundles_post_ra>
// kernel: tpu_custom_call.1
= control target key start
LH: loop header
LB: loop body
LE: loop exit
PB: predicated region body
PF: predicated region fallthrough
CT: control target
= control target key end

     0   :  { %s2267_s0 = inlined_call_operand.hbm [shape: f32[2,8,32], index: 0, kind: input, shape index: {}]   ;;  %s2268_s1 = inlined_call_operand.vmem [shape: f32[2,1,8], index: 1, kind: input, shape index: {}]   ;;  %s2269_s2 = inlined_call_operand.hbm [shape: f32[32,96], index: 2, kind: input, shape index: {}]   ;;  %s2270_s3 = inlined_call_operand.vmem [shape: f32[1,96], index: 3, kind: input, shape index: {}]   ;;  %s2271_s4 = inlined_call_operand.hbm [shape: f32[32,32], index: 4, kind: input, shape index: {}]   ;;  %s2272_s5 = inlined_call_operand.vmem [shape: f32[1,32], index: 5, kind: input, shape index: {}]   ;;  %s2273_s6 = inlined_call_operand.vmem [shape: f32[1,32], index: 6, kind: input, shape index: {}]   ;;  %s2274_s7 = inlined_call_operand.vmem [shape: f32[1,32], index: 7, kind: input, shape index: {}]   ;;  %s2275_s8 = inlined_call_operand.hbm [shape: f32[2,8,32], index: 8, kind: output, shape index: {}]  }
   0x1   :  { %2283 = sst [smem:[#allocation16_spill]] %s2275_s8 }
   0x2   :  { %13 = vsyncpa [#allocation5], 0 }
   0x3   :  { %15 = vsyncpa [#allocation5 + $0x1], 0 }
   0x4   :  { %16 = vsyncpa [#allocation8], 0 }
   0x5   :  { %17 = vsyncpa [#allocation6], 0 }
   0x6   :  { %19 = vsyncpa [#allocation6 + $0x1], 0  ;;  %s1920_s27 = smov 0   ;;  %s1922_s28 = smov 0  }
   0x7   :  { %s1924_s29 = smov 0   ;;  %s1926_s30 = smov 0  }
   0x8   :  { %s1928_s9 = smov 0   ;;  %s1930_s10 = smov 0  }
   0x9 LB: > { %2284 = sst [smem:[#allocation14_spill]] %s1830_s27  ;;  %s1422_s11 = sadd.s32 4294967295, %s1850_s10   ;;  %s1850_s10 = sphi %s1930_s10, %s25_s10   ;;  %s1846_s9 = sphi %s1928_s9, %s2306_s9   ;;  %s1842_s30 = sphi %s1926_s30, %s2305_s30   ;;  %s1838_s29 = sphi %s1924_s29, %s2304_s29   ;;  %s1834_s28 = sphi %s1922_s28, %s2303_s28   ;;  %s1830_s27 = sphi %s1920_s27, %s2302_s27  }
   0xa   : > { %s1423_s12 = sadd.s32 4294967294, %s1850_s10   ;;  %p57_p0 = scmp.ne.s32.totalorder %s1834_s28, %s1830_s27 }
   0xb   : > { %p1954_p1 = scmp.eq.s32.totalorder %s1422_s11, 0  ;;  %p1958_p2 = scmp.eq.s32.totalorder %s1422_s11, 1 }
   0xc   : > { %p241_p3 = scmp.eq.s32.totalorder %s1423_s12, 1  ;;  %p1424_p5 = scmp.ge.s32.totalorder %s1850_s10, 1 }
   0xd   : > { %s2285_s13 = scalar_select %p1954_p1, 1, 0 }
   0xe   : > { %p1964_p4 = por %p1954_p1, %p57_p0  ;;  %p1969_p6 = por %p241_p3, %p57_p0 }
   0xf   : > { %p248_p7 = scmp.lt.s32.totalorder %s1850_s10, 3  ;;  %s1852_s18 = smov [#allocation7]  }
  0x10   : > { %s2287_s15 = scalar_select %p1964_p4, 1, 0 }
  0x11   : > { %s2288_s16 = scalar_select %p1969_p6, 1, 0 }
  0x12   : > { %p1974_p8 = pnand %p1424_p5, %p248_p7  ;;  %s260_s19 = sshll.u32 %s1852_s18, 4  ;;  %s1978_s19 = int_to_ptr.vmem [resolvable:$true] %s260_s19 }
  0x13   : > { %2289 = sst [smem:[#allocation15_spill]] %s2288_s16  ;;  %s1853_s21 = smov [#allocation9]  }
  0x14   : > { %p1570_p9 = pneg %p1974_p8  ;;  %s276_s22 = sshll.u32 %s1853_s21, 4  ;;  %s1989_s22 = int_to_ptr.vmem [resolvable:$true] %s276_s22 }
  0x15   : > { %s1678_s25 = scalar_lea.hbm %s2269_s2, 512 }
  0x16   : > { %p1985_p11 = pnand %p1570_p9, %p1954_p1  ;;  %p1679_p12 = scmp.ne.s32.totalorder %s2269_s2, %s1678_s25 }
  0x17   : > { %p1685_p5 = scmp.lt.u32.totalorder %s1678_s25, %s2269_s2 }
  0x18   : > { %p1680_p13 = pneg %p1985_p11 }
  0x1a   : > { %p1681_p0 = pnand %p1680_p13, %p1679_p12 }
  0x1c   : > { %p1682_p3 = pneg %p1681_p0 }
  0x1e   : > { %p1687_p7 = pnand %p1685_p5, %p1682_p3 }
  0x20   : > { %1690 = shalt.err (!%p1687_p7)
}
  0x21   : > { %s1691_s21 = scalar_lea.vmem %s1978_s19, 512  ;;  %p1699_p1 = scmp.lt.s32.totalorder %s1978_s19, %s1978_s19 }
  0x22   : > { %p1692_p9 = scmp.ne.s32.totalorder %s1978_s19, %s1691_s21  ;;  %p1700_p12 = scmp.lt.s32.totalorder %s1691_s21, %s1691_s21 }
  0x24   : > { %p1694_p10 = pnand %p1692_p9, %p1680_p13  ;;  %p1701_p0 = por %p1700_p12, %p1699_p1 }
  0x26   : > { %p1695_p6 = pneg %p1694_p10 }
  0x28   : > { %p1702_p4 = pnand %p1701_p0, %p1695_p6 }
  0x2a   : > { %1705 = shalt.err (!%p1702_p4)
}
  0x2b   : > { %s1854_s23 = smov 128   ;;  %s1855_s24 = smov 8  }
  0x2c   : > { %1573 = dma.hbm_to_vmem [thread:$0]  (!%p1985_p11), %s2269_s2, 512, %s1978_s19, [#allocation8], %s1854_s23, %s1854_s23, %s1855_s24  }
  0x2d   : > { %s1706_s18 = scalar_lea.hbm %s2271_s4, 512 }
  0x2e   : > { %p1707_p1 = scmp.ne.s32.totalorder %s2271_s4, %s1706_s18  ;;  %p1713_p10 = scmp.lt.u32.totalorder %s1706_s18, %s2271_s4 }
  0x30   : > { %p1709_p4 = pnand %p1707_p1, %p1680_p13 }
  0x32   : > { %p1710_p6 = pneg %p1709_p4 }
  0x34   : > { %p1715_p3 = pnand %p1713_p10, %p1710_p6 }
  0x36   : > { %1718 = shalt.err (!%p1715_p3)
}
  0x37   : > { %s1719_s19 = scalar_lea.vmem %s1989_s22, 512  ;;  %p1727_p12 = scmp.lt.s32.totalorder %s1989_s22, %s1989_s22 }
  0x38   : > { %p1720_p5 = scmp.ne.s32.totalorder %s1989_s22, %s1719_s19  ;;  %p1728_p0 = scmp.lt.s32.totalorder %s1719_s19, %s1719_s19 }
  0x3a   : > { %p1722_p7 = pnand %p1720_p5, %p1680_p13  ;;  %p1729_p1 = por %p1728_p0, %p1727_p12 }
  0x3c   : > { %p1723_p9 = pneg %p1722_p7 }
  0x3e   : > { %p1730_p4 = pnand %p1729_p1, %p1723_p9 }
  0x40   : > { %1733 = shalt.err (!%p1730_p4)
}
  0x41   : > { %1576 = dma.hbm_to_vmem [thread:$0]  (!%p1985_p11), %s2271_s4, 512, %s1989_s22, [#allocation8], %s1854_s23, %s1854_s23, %s1855_s24  }
  0x42   : > { %s37_s16 = sadd.s32 1, %s1846_s9  ;;  %s44_s25 = sadd.s32 1, %s1838_s29 }
  0x43   : > { %p39_p13 = scmp.ge.s32.totalorder %s37_s16, 2  ;;  %p51_p6 = scmp.ne.s32.totalorder %s1838_s29, %s1834_s28 }
  0x44   : > { %p52_p10 = scmp.eq.s32.totalorder %s1850_s10, 0  ;;  %p1587_p3 = scmp.lt.s32.totalorder %s1850_s10, 2 }
  0x45   : > { %s2308_s16 = smov (%p39_p13, %s37_s16), 0  ;;  %p2053_p7 = por %p1958_p2, %p51_p6 }
  0x46   : > { %p53_p5 = por %p52_p10, %p51_p6  ;;  %s41_s26 = ssub.s32 %s1846_s9, %s2308_s16 }
  0x47   : > { %s2292_s20 = scalar_select %p2053_p7, 1, 0 }
  0x48   : > { %s299_s11 = sand.u32 1, %s1838_s29   ;;  %p42_p9 = scmp.eq.s32.totalorder %s41_s26, 0 }
  0x49   : > { %s1428_s22 = sshll.u32 %s299_s11, 3  ;;  %s1429_s23 = sshll.u32 %s1846_s9, 7 }
  0x4a   : > { %s2062_s24 = scalar_select %p42_p9, %s1838_s29, %s44_s25  }
  0x4b   : > { %s2067_s21 = scalar_lea.hbm %s2267_s0, %s1429_s23  ;;  %s303_s14 = scalar_lea.vmem [#allocation4], %s1428_s22 }
  0x4c   : > { %s310_s19 = sshll.u32 %s303_s14, 4  ;;  %p2071_p2 = pnand %p1587_p3, %p53_p5  ;;  %s2075_s19 = int_to_ptr.vmem [resolvable:$true] %s310_s19 }
  0x4d   : > { %s300_s27 = scalar_lea.sflag [#allocation5], %s299_s11  ;;  %s1734_s25 = scalar_lea.hbm %s2067_s21, 128 }
  0x4e   : > { %p1735_p11 = scmp.ne.s32.totalorder %s2067_s21, %s1734_s25  ;;  %p1736_p12 = pneg %p2071_p2 }
  0x4f   : > { %s1739_s23 = scalar_lea.hbm %s2267_s0, 256  ;;  %p1740_p4 = scmp.lt.u32.totalorder %s2067_s21, %s2267_s0 }
  0x50   : > { %p1737_p0 = pnand %p1736_p12, %p1735_p11  ;;  %p1741_p13 = scmp.lt.u32.totalorder %s1739_s23, %s1734_s25 }
  0x51   : > { %p1743_p10 = scmp.lt.u32.totalorder %s1734_s25, %s2067_s21 }
  0x52   : > { %p1738_p1 = pneg %p1737_p0  ;;  %p1742_p6 = por %p1741_p13, %p1740_p4 }
  0x54   : > { %p1744_p3 = por %p1743_p10, %p1742_p6 }
  0x56   : > { %p1745_p5 = pnand %p1744_p3, %p1738_p1 }
  0x58   : > { %1748 = shalt.err (!%p1745_p5)
}
  0x59   : > { %s1749_s11 = scalar_lea.vmem %s2075_s19, 128  ;;  %s1856_s14 = smov [#allocation4]  }
  0x5a   : > { %p1750_p9 = scmp.ne.s32.totalorder %s2075_s19, %s1749_s11  ;;  %s1754_s26 = sshll.u32 %s1856_s14, 4  ;;  %s1755_s26 = int_to_ptr.vmem [resolvable:$false] %s1754_s26 }
  0x5b   : > { %s1756_s22 = scalar_lea.vmem %s1755_s26, 256  ;;  %p1757_p7 = scmp.lt.s32.totalorder %s2075_s19, %s1755_s26 }
  0x5c   : > { %p1752_p11 = pnand %p1750_p9, %p1736_p12  ;;  %p1758_p4 = scmp.lt.s32.totalorder %s1756_s22, %s1749_s11 }
  0x5e   : > { %p1753_p0 = pneg %p1752_p11  ;;  %p1759_p13 = por %p1758_p4, %p1757_p7 }
  0x60   : > { %p1760_p6 = pnand %p1759_p13, %p1753_p0 }
  0x62   : > { %1763 = shalt.err (!%p1760_p6)
}
  0x63   : > { %1580 = dma.hbm_to_vmem [thread:$0]  (!%p2071_p2), %s2067_s21, 128, %s2075_s19, %s300_s27  }
  0x64   : > { %325 = sbr.rel (%p1974_p8) target bundleno = 2096 (0x830), region = 52  ;;  %s2105_s25 = sand.u32 (!%p1974_p8), 1, %s1834_s28  }
  0x65   : > { %s1431_s23 = sshll.u32 (!%p1974_p8), %s2105_s25, 3  ;;  %s328_s12 = scalar_lea.sflag (!%p1974_p8), [#allocation5], %s2105_s25 }
  0x66   : > { %s331_s18 = scalar_lea.vmem (!%p1974_p8), [#allocation4], %s1431_s23  ;;  %p2294_p7 = scmp.ne.s32.totalorder (!%p1974_p8), %s2287_s15, 0 }
  0x6b   : > { %1817 = dma.done.wait (%p2294_p7), %s328_s12, 128  }
  0x6c   : > { %1819 = vsyncadd (%p2294_p7), %s328_s12, 4294967168  ;;  %p2295_p2 = scmp.ne.s32.totalorder %s2285_s13, 0 }
  0x6e   : > { %1821 = dma.done.wait (%p2295_p2), [#allocation8], 1024  }
  0x6f   : > { %1823 = vsyncadd (%p2295_p2), [#allocation8], 4294966272  ;;  %v1857_v0 = vmov 0.0|0.0   ;;  %vm1858_vm0 = vmmov 0   ;;  %v1859_v1 = vmov 0.0   ;;  %v383_v2 = vld [vmem:[#allocation7] sm:$0xff]  ;;  %v477_v22 = vlaneseq }
  0x70   : > { %1546 = vmatprep.subr.bf16.mxu0 %v1857_v0  ;;  %1492 = vmatprep.mubr.msk.f32.mxu0 %vm1858_vm0, %v1859_v1  ;;  %v384_v3 = vld [vmem:[#allocation7 + $0x8] sm:$0xff]  ;;  %v385_v4 = vld [vmem:[#allocation7 + $0x10] sm:$0xff]  ;;  %v386_v6 = vld [vmem:[#allocation7 + $0x18] sm:$0xff]  ;;  %vm394_vm1 = vcmask 261120   ;;  %vm468_vm2 = vcmask 785408   ;;  %s1860_s17 = smov 64  }
  0x71   : > { %1495 = vmatprep.subr.mxu1 %v1859_v1  ;;  %1497 = vmatprep.mubr.msk.f32.mxu1 %vm1858_vm0, %v1859_v1  ;;  %v1547_v5 = vpack.c.bf16 %v384_v3, %v383_v2  ;;  %v1550_v7 = vpack.c.bf16 %v386_v6, %v385_v4  ;;  %v2126_v8 = vld [vmem:[%s331_s18] sm:$0xff]  ;;  %v1435_v9 = vld [vmem:[%s2270_s3] ss:$0 sm:$0xff]  ;;  %s1861_s21 = smov 96   ;;  %s1862_s19 = smov 88   ;;  %vm488_vm3 = vcmask 64512  }
  0x72   : > { %s1863_s8 = smov 120   ;;  %s1864_s27 = smov 80   ;;  %v478_v25 = vshrl.u32 %v477_v22, 7  ;;  %vm825_vm4 = vcmask 130112   ;;  %vm1000_vm5 = vcmask 195712   ;;  %vm1175_vm6 = vcmask 261312  }
  0x73   : > { %1548 = vmatpush3.bf16.msra.mxu0 %v1547_v5  ;;  %s1865_s11 = smov 112   ;;  %s1866_s14 = smov 72  }
  0x74   : > { %1549 = vmatprep.subr.bf16.mxu0 %v1857_v0  ;;  %s1867_s26 = smov 104   ;;  %p375_p8 = scmp.lt.s32.totalorder %s1842_s30, 1  ;;  %v479_v27 = vsub.s32 0, %v478_v25 }
  0x75   : > { %s1868_s15 = smov 56   ;;  %p2297_p1 = scmp.ne.s32.totalorder %s2292_s20, 0 }
  0x76   : > { %s376_s22 = scalar_select %p375_p8, %s1842_s30, 1 }
  0x77   : > { %1551 = vmatpush3.bf16.msra.mxu0 %v1550_v7 }
  0x78   : > { %1515 = vmatprep.subr.mxu0 %v1859_v1  ;;  %s377_s13 = scalar_lea.vmem %s2268_s1, %s376_s22 }
  0x79   : > { %v473_v23 = vld [vmem:[%s377_s13] sm:$0x1]  ;;  %s1455_s13 = sshll.u32 %s1842_s30, 7  ;;  %s1874_s30 = smov [#allocation10]  }
  0x7a   : > { %1493 = vmatmul.mubr.msk.f32.vlgmr.msra.gmra.mrb[0].mxu0 %vm394_vm1, %v2126_v8  ;;  %v1437_v24 = vadd.f32 -1.0, %v473_v23 }
  0x7b   : > { %1517 = vmatprep.mubr.msk.f32.mxu0 %vm1858_vm0, %v1859_v1 }
  0x7c   : > { %v475_v26 = vmul.f32 1e+09, %v1437_v24 }
  0x7e   : > { %v480_v28 = vrot.slane %v475_v26, %v479_v27 }
 0x14d   : > { %v464_v10 = vpop.f32.mrb[0].mxu0 }
 0x14e   : > { %v465_v11 = vadd.f32 %v1435_v9, %v464_v10  ;;  %v1494_v12 = vpop.f32.mrb[1].mxu0 }
 0x150   : > { %469 = vst.msk [vmem:[#allocation2] sm:$0xff] %vm468_vm2, %v465_v11 }
 0x157   : > { %v2136_v13 = vld [vmem:[#allocation2] sm:$0xff] }
 0x158   : > { %573 = vrot.lane.b32.xlu1 %v2136_v13, %s1860_s17  ;;  %486 = vrot.lane.b32.xlu0 %v2136_v13, %s1861_s21  ;;  %s1869_s17 = smov 40   ;;  %s1870_s21 = smov 48  }
 0x15c   : > { %658 = vrot.lane.b32.xlu1 %v2136_v13, %s1862_s19  ;;  %s1871_s19 = smov 8  }
 0x160   : > { %655 = vrot.lane.b32.xlu1 %v2136_v13, %s1863_s8  ;;  %s1872_s8 = smov 16  }
 0x164   : > { %833 = vrot.lane.b32.xlu1 %v2136_v13, %s1864_s27  ;;  %s1873_s27 = smov 24  }
 0x168   : > { %830 = vrot.lane.b32.xlu1 %v2136_v13, %s1865_s11  ;;  %s1297_s11 = scalar_lea.sflag [#allocation6], %s2105_s25 }
 0x16c   : > { %1008 = vrot.lane.b32.xlu1 %v2136_v13, %s1866_s14 }
 0x170   : > { %1005 = vrot.lane.b32.xlu1 %v2136_v13, %s1867_s26 }
 0x1ca   : > { %v574_v14 = vpop.permute.xlu1 %573  ;;  %v487_v15 = vpop.permute.xlu0 %486 }
 0x1cb   : > { %1496 = vmatpush3.xpose.msk.msra.mxu1 %vm488_vm3, %v487_v15  ;;  %v1186_v15 = vld [vmem:[#allocation9] sm:$0xff] }
 0x1cc   : > { %1500 = vmatprep.subr.mxu1 %v1859_v1 }
 0x1ce   : > { %v659_v16 = vpop.permute.xlu1 %658  ;;  %1498 = vmatmul.mubr.msk.f32.vlgmr.msra.gmra.mrb[0].mxu1 %vm488_vm3, %v2136_v13 }
 0x1cf   : > { %1501 = vmatpush3.msra.mxu1 %v574_v14  ;;  %1502 = vmatprep.mubr.msk.f32.mxu1 %vm1858_vm0, %v1859_v1 }
 0x1d0   : > { %1505 = vmatprep.subr.mxu1 %v1859_v1 }
 0x1d2   : > { %v656_v17 = vpop.permute.xlu1 %655 }
 0x1d6   : > { %v834_v18 = vpop.permute.xlu1 %833 }
 0x1d7   : > { %1516 = vmatpush3.xpose.msk.msra.mxu0 %vm488_vm3, %v834_v18  ;;  %v1189_v18 = vld [vmem:[#allocation9 + $0x18] sm:$0xff] }
 0x1d8   : > { %1525 = vmatprep.subr.mxu0 %v1859_v1 }
 0x1da   : > { %v831_v19 = vpop.permute.xlu1 %830 }
 0x1db   : > { %1518 = vmatmul.mubr.msk.f32.vlgmr.msra.gmra.mrb[2].mxu0 %vm488_vm3, %v831_v19 }
 0x1dc   : > { %1527 = vmatprep.mubr.msk.f32.mxu0 %vm1858_vm0, %v1859_v1 }
 0x1de   : > { %v1009_v20 = vpop.permute.xlu1 %1008 }
 0x1df   : > { %1526 = vmatpush3.xpose.msk.msra.mxu0 %vm488_vm3, %v1009_v20 }
 0x1e0   : > { %1552 = vmatprep.subr.bf16.mxu0 %v1857_v0 }
 0x1e2   : > { %v1006_v21 = vpop.permute.xlu1 %1005 }
 0x1e3   : > { %1528 = vmatmul.mubr.msk.f32.vlgmr.msra.gmra.mrb[4].mxu0 %vm488_vm3, %v1006_v21 }
 0x1e4   : > { %1543 = vmatprep.mubr.msk.f32.mxu0 %vm1858_vm0, %v1859_v1 }
 0x2a1   : > { %v560_v29 = vpop.f32.mrb[0].mxu1 }
 0x2a2   : > { %v561_v30 = vadd.f32 %v560_v29, %v480_v28  ;;  %v1499_v31 = vpop.f32.mrb[1].mxu1 }
 0x2a4   : > { %v564_v32 = vsel %vm488_vm3, %v561_v30, -inf }
 0x2a5   : > { %565 = vmax.xlane.f32.xlu0 %v564_v32 }
 0x2ae   : > { %v905_v33 = vpop.f32.mrb[2].mxu0 }
 0x2af   : > { %v1519_v34 = vpop.f32.mrb[3].mxu0  ;;  %v906_v37 = vadd.f32 %v905_v33, %v480_v28 }
 0x2b1   : > { %v909_v39 = vsel %vm488_vm3, %v906_v37, -inf }
 0x2b6   : > { %v1080_v35 = vpop.f32.mrb[4].mxu0 }
 0x2b7   : > { %v1529_v36 = vpop.f32.mrb[5].mxu0  ;;  %v1081_v38 = vadd.f32 %v1080_v35, %v480_v28  ;;  %v1450_v35 = vld [vmem:[%s2272_s5] ss:$0 sm:$0xff] }
 0x2b8   : > { %v1184_v36 = vadd.f32 %v1450_v35, %v2126_v8 }
 0x2b9   : > { %v1084_v40 = vsel %vm488_vm3, %v1081_v38, -inf }
 0x2bb   : > { %743 = vrot.lane.b32.xlu0 %v2136_v13, %s1868_s15  ;;  %s374_s15 = scalar_lea.vmem [#allocation10], %s1431_s23  ;;  %s1768_s23 = sshll.u32 %s1874_s30, 4  ;;  %s1769_s23 = int_to_ptr.vmem [resolvable:$false] %s1768_s23 }
 0x2bc   : > { %s1770_s26 = scalar_lea.vmem %s1769_s23, 256 }
 0x2da   : > { %910 = vmax.xlane.f32.xlu0 %v909_v39 }
 0x2de   : > { %1085 = vmax.xlane.f32.xlu0 %v1084_v40 }
 0x2f4   : > { %1093 = vrot.lane.b32.xlu0 %v2136_v13, %s1869_s17  ;;  %s1311_s17 = sshll.u32 %s374_s15, 4  ;;  %s2219_s17 = int_to_ptr.vmem [resolvable:$true] %s1311_s17 }
 0x2f5   : > { %s1764_s14 = scalar_lea.vmem %s2219_s17, 128  ;;  %p1771_p5 = scmp.lt.s32.totalorder %s2219_s17, %s1769_s23 }
 0x2f6   : > { %p1765_p12 = scmp.ne.s32.totalorder %s2219_s17, %s1764_s14  ;;  %p1772_p9 = scmp.lt.s32.totalorder %s1770_s26, %s1764_s14 }
 0x2f8   : > { %p1766_p10 = pnand %p1765_p12, %p2297_p1  ;;  %p1773_p11 = por %p1772_p9, %p1771_p5 }
 0x2fa   : > { %p1767_p3 = pneg %p1766_p10 }
 0x2fc   : > { %p1774_p0 = pnand %p1773_p11, %p1767_p3 }
 0x332   : > { %v566_v41 = vpop.xlane.xlu0 %565 }
 0x333   : > { %v567_v42 = vsub.f32 %v561_v30, %v566_v41 }
 0x335   : > { %v568_v43 = vmul.f32 1.442695, %v567_v42 }
 0x336   : > { %v744_v45 = vpop.permute.xlu0 %743 }
 0x337   : > { %1660 = vpow2.f32 %v568_v43 }
 0x341   : > { %v1661_v44 = vpop.eup %1660 }
 0x342   : > { %1503 = vmatmul.mubr.msk.f32.vlgmr.msra.gmra.mrb[2].mxu1 %vm488_vm3, %v1661_v44  ;;  %v570_v7 = vsel %vm488_vm3, %v1661_v44, 0.0 }
 0x343   : > { %1506 = vmatpush3.xpose.msk.msra.mxu1 %vm488_vm3, %v659_v16  ;;  %1507 = vmatprep.mubr.msk.f32.mxu1 %vm1858_vm0, %v1859_v1  ;;  %v1187_v16 = vld [vmem:[#allocation9 + $0x8] sm:$0xff] }
 0x344   : > { %1510 = vmatprep.subr.mxu1 %v1859_v1 }
 0x346   : > { %1508 = vmatmul.mubr.msk.f32.vlgmr.msra.gmra.mrb[4].mxu1 %vm488_vm3, %v656_v17  ;;  %v1188_v17 = vld [vmem:[#allocation9 + $0x10] sm:$0xff] }
 0x347   : > { %1511 = vmatpush3.msra.mxu1 %v744_v45  ;;  %1512 = vmatprep.mubr.msk.f32.mxu1 %vm1858_vm0, %v1859_v1  ;;  %v1556_v21 = vpack.c.bf16 %v1189_v18, %v1188_v17 }
 0x348   : > { %1520 = vmatprep.subr.mxu1 %v1859_v1 }
 0x367   : > { %v911_v52 = vpop.xlane.xlu0 %910 }
 0x368   : > { %v912_v53 = vsub.f32 %v906_v37, %v911_v52 }
 0x36a   : > { %v913_v54 = vmul.f32 1.442695, %v912_v53 }
 0x36b   : > { %v1086_v57 = vpop.xlane.xlu0 %1085 }
 0x36c   : > { %1662 = vpow2.f32 %v913_v54  ;;  %v1087_v58 = vsub.f32 %v1081_v38, %v1086_v57 }
 0x36e   : > { %v1088_v61 = vmul.f32 1.442695, %v1087_v58 }
 0x36f   : > { %v1094_v5 = vpop.permute.xlu0 %1093 }
 0x376   : > { %v1663_v55 = vpop.eup %1662 }
 0x377   : > { %v915_v56 = vsel %vm488_vm3, %v1663_v55, 0.0 }
 0x415   : > { %v645_v46 = vpop.f32.mrb[2].mxu1 }
 0x416   : > { %v1504_v47 = vpop.f32.mrb[3].mxu1 }
 0x419   : > { %v730_v48 = vpop.f32.mrb[4].mxu1 }
 0x41a   : > { %v731_v49 = vadd.f32 %v730_v48, %v480_v28  ;;  %v1509_v50 = vpop.f32.mrb[5].mxu1 }
 0x41c   : > { %v734_v51 = vsel %vm488_vm3, %v731_v49, -inf }
 0x41d   : > { %735 = vmax.xlane.f32.xlu1 %v734_v51  ;;  %v1453_v51 = vld [vmem:[%s2274_s7] ss:$0 sm:$0xff] }
 0x42e   : > { %918 = vrot.lane.b32.xlu1 %v2136_v13, %s1870_s21 }
 0x452   : > { %916 = vadd.xlane.f32.xlu1 %v915_v56 }
 0x4aa   : > { %v736_v59 = vpop.xlane.xlu1 %735 }
 0x4ab   : > { %v737_v60 = vsub.f32 %v731_v49, %v736_v59  ;;  %v1452_v49 = vld [vmem:[%s2273_s6] ss:$0 sm:$0xff] }
 0x4ad   : > { %v738_v62 = vmul.f32 1.442695, %v737_v60 }
 0x4ae   : > { %v919_v2 = vpop.permute.xlu1 %918 }
 0x4af   : > { %1664 = vpow2.f32 %v738_v62 }
 0x4b0   : > { %1666 = vpow2.f32 %v1088_v61 }
 0x4b9   : > { %v1665_v63 = vpop.eup %1664 }
 0x4ba   : > { %1513 = vmatmul.mubr.msk.f32.vlgmr.msra.gmra.mrb[6].mxu1 %vm488_vm3, %v1665_v63  ;;  %v740_v3 = vsel %vm488_vm3, %v1665_v63, 0.0  ;;  %v1667_v4 = vpop.eup %1666 }
 0x4bb   : > { %1521 = vmatpush3.msra.mxu1 %v919_v2  ;;  %741 = vadd.xlane.f32.xlu0 %v740_v3  ;;  %v1090_v6 = vsel %vm488_vm3, %v1667_v4, 0.0 }
 0x4bc   : > { %1522 = vmatprep.mubr.msk.f32.mxu1 %vm1858_vm0, %v1859_v1  ;;  %1530 = vmatprep.subr.mxu1 %v1859_v1 }
 0x4be   : > { %1523 = vmatmul.mubr.msk.f32.vlgmr.msra.gmra.mrb[8].mxu1 %vm488_vm3, %v1663_v55 }
 0x4bf   : > { %1531 = vmatpush3.msra.mxu1 %v1094_v5  ;;  %1091 = vadd.xlane.f32.xlu0 %v1090_v6 }
 0x4c0   : > { %1532 = vmatprep.mubr.msk.f32.mxu1 %vm1858_vm0, %v1859_v1  ;;  %v1553_v1 = vpack.c.bf16 %v1187_v16, %v1186_v15 }
 0x4c2   : > { %1533 = vmatmul.mubr.msk.f32.vlgmr.msra.gmra.mrb[10].mxu1 %vm488_vm3, %v1667_v4  ;;  %1554 = vmatpush3.bf16.msra.mxu0 %v1553_v1 }
 0x4c3   : > { %571 = vadd.xlane.f32.xlu0 %v570_v7  ;;  %1555 = vmatprep.subr.bf16.mxu0 %v1857_v0 }
 0x4c6   : > { %1557 = vmatpush3.bf16.msra.mxu0 %v1556_v21 }
 0x4df   : > { %v917_v14 = vpop.xlane.xlu1 %916 }
 0x548   : > { %v742_v9 = vpop.xlane.xlu0 %741 }
 0x54c   : > { %v1092_v10 = vpop.xlane.xlu0 %1091 }
 0x550   : > { %v572_v11 = vpop.xlane.xlu0 %571 }
 0x551   : > { %1668 = vrcp.f32 %v572_v11 }
 0x552   : > { %1670 = vrcp.f32 %v742_v9 }
 0x553   : > { %1672 = vrcp.f32 %v917_v14 }
 0x554   : > { %1674 = vrcp.f32 %v1092_v10 }
 0x55b   : > { %v1669_v12 = vpop.eup %1668 }
 0x55c   : > { %v650_v13 = vmul.f32 %v1669_v12, %v645_v46  ;;  %v1671_v19 = vpop.eup %1670 }
 0x55d   : > { %v1673_v24 = vpop.eup %1672 }
 0x55e   : > { %651 = vst.msk [vmem:[#allocation3] sm:$0xff] %vm488_vm3, %v650_v13  ;;  %v1675_v28 = vpop.eup %1674 }
 0x58d   : > { %v815_v20 = vpop.f32.mrb[6].mxu1 }
 0x58e   : > { %v820_v22 = vmul.f32 %v1671_v19, %v815_v20  ;;  %v1514_v23 = vpop.f32.mrb[7].mxu1 }
 0x590   : > { %822 = vrot.lane.b32.xlu0 %v820_v22, %s1871_s19 }
 0x591   : > { %v990_v25 = vpop.f32.mrb[8].mxu1 }
 0x592   : > { %v995_v26 = vmul.f32 %v1673_v24, %v990_v25  ;;  %v1524_v27 = vpop.f32.mrb[9].mxu1 }
 0x594   : > { %997 = vrot.lane.b32.xlu1 %v995_v26, %s1872_s8  ;;  %s2296_s8 = sld [smem:[#allocation16_spill]] }
 0x595   : > { %v1165_v29 = vpop.f32.mrb[10].mxu1 }
 0x596   : > { %v1170_v30 = vmul.f32 %v1675_v28, %v1165_v29  ;;  %v1534_v31 = vpop.f32.mrb[11].mxu1 }
 0x598   : > { %1172 = vrot.lane.b32.xlu0 %v1170_v30, %s1873_s27 }
 0x59a   : > { %s2217_s27 = scalar_lea.hbm %s2296_s8, %s1455_s13 }
 0x602   : > { %v823_v32 = vpop.permute.xlu0 %822 }
 0x603   : > { %826 = vst.msk [vmem:[#allocation3] sm:$0xff] %vm825_vm4, %v823_v32 }
 0x606   : > { %v998_v0 = vpop.permute.xlu1 %997 }
 0x607   : > { %1001 = vst.msk [vmem:[#allocation3] sm:$0xff] %vm1000_vm5, %v998_v0 }
 0x60a   : > { %v1173_v33 = vpop.permute.xlu0 %1172 }
 0x60b   : > { %1176 = vst.msk [vmem:[#allocation3] sm:$0xff] %vm1175_vm6, %v1173_v33 }
 0x612   : > { %v1185_v34 = vld [vmem:[#allocation3] sm:$0xff] }
 0x613   : > { %1544 = vmatmul.mubr.msk.f32.vlgmr.msra.gmra.mrb[6].mxu0 %vm394_vm1, %v1185_v34 }
 0x6e6   : > { %v1260_v37 = vpop.f32.mrb[6].mxu0 }
 0x6e7   : > { %v1264_v38 = vadd.f32 %v1260_v37, %v1184_v36  ;;  %v1545_v39 = vpop.f32.mrb[7].mxu0 }
 0x6e9   : > { %v1265_v40 = vsel %vm394_vm1, %v1264_v38, 0.0 }
 0x6ea   : > { %1266 = vadd.xlane.f32.xlu0 %v1265_v40 }
 0x777   : > { %v1267_v41 = vpop.xlane.xlu0 %1266 }
 0x778   : > { %v1269_v42 = vmul.f32 0.03125, %v1267_v41 }
 0x77a   : > { %v1270_v43 = vsub.f32 %v1264_v38, %v1269_v42 }
 0x77c   : > { %v1271_v44 = vmul.f32 %v1270_v43, %v1270_v43 }
 0x77e   : > { %v1272_v45 = vsel %vm394_vm1, %v1271_v44, 0.0 }
 0x77f   : > { %1273 = vadd.xlane.f32.xlu1 %v1272_v45 }
 0x80c   : > { %v1274_v46 = vpop.xlane.xlu1 %1273 }
 0x80d   : > { %v1275_v47 = vmul.f32 0.03125, %v1274_v46 }
 0x80f   : > { %v1276_v48 = vadd.f32 1e-05, %v1275_v47 }
 0x811   : > { %1676 = vrsqrt.f32 %v1276_v48 }
 0x81b   : > { %v1677_v8 = vpop.eup %1676 }
 0x81c   : > { %v1278_v50 = vmul.f32 %v1677_v8, %v1270_v43 }
 0x81e   : > { %v1286_v52 = vmul.f32 %v1452_v49, %v1278_v50 }
 0x820   : > { %v1294_v53 = vadd.f32 %v1453_v51, %v1286_v52 }
 0x822   : > { %1295 = vst.msk [vmem:[%s374_s15] sm:$0xff] %vm394_vm1, %v1294_v53 }
 0x823   : > { %1777 = shalt.err (!%p1774_p0)
}
 0x824   : > { %s1778_s25 = scalar_lea.hbm %s2217_s27, 128  ;;  %s1782_s18 = scalar_lea.hbm %s2296_s8, 256 }
 0x825   : > { %p1779_p4 = scmp.ne.s32.totalorder %s2217_s27, %s1778_s25  ;;  %p1783_p7 = scmp.lt.u32.totalorder %s2217_s27, %s2296_s8 }
 0x826   : > { %p1784_p2 = scmp.lt.u32.totalorder %s1782_s18, %s1778_s25  ;;  %p1786_p12 = scmp.lt.u32.totalorder %s1778_s25, %s2217_s27 }
 0x827   : > { %p1780_p13 = pnand %p1779_p4, %p2297_p1 }
 0x828   : > { %p1785_p8 = por %p1784_p2, %p1783_p7 }
 0x829   : > { %p1781_p6 = pneg %p1780_p13 }
 0x82a   : > { %p1787_p10 = por %p1786_p12, %p1785_p8 }
 0x82c   : > { %p1788_p3 = pnand %p1787_p10, %p1781_p6 }
 0x82e   : > { %1791 = shalt.err (!%p1788_p3)
}
 0x82f   : > { %1568 = dma.vmem_to_hbm [thread:$0]  (%p2297_p1), %s2219_s17, 128, %s2217_s27, %s1297_s11  }
 0x830 PF: > { %s2298_s21 = sld [smem:[#allocation14_spill]]  ;;  %s2299_s19 = sld [smem:[#allocation15_spill]] }
 0x831   : > { %p2301_p9 = scmp.ge.s32.totalorder %s1850_s10, 2 }
 0x836   : > { %s1323_s14 = sand.u32 1, %s2298_s21   ;;  %p2300_p5 = scmp.ne.s32.totalorder %s2299_s19, 0 }
 0x837   : > { %s1324_s30 = scalar_lea.sflag [#allocation6], %s1323_s14 }
 0x838   : > { %p1582_p11 = pnand %p2301_p9, %p2300_p5 }
 0x83a   : > { %1825 = dma.done.wait (!%p1582_p11), %s1324_s30, 128  }
 0x83b   : > { %1827 = vsyncadd (!%p1582_p11), %s1324_s30, 4294967168  ;;  %s25_s10 = sadd.s32 1, %s1850_s10   ;;  %s2302_s27 = smov %s1834_s28 }
 0x83c   : > { %p22_p0 = scmp.ge.s32.totalorder %s25_s10, 4   ;;  %s2303_s28 = smov %s1838_s29 }
 0x83d   : > { %s2304_s29 = smov %s2062_s24  ;;  %s2305_s30 = smov %s1846_s9 }
 0x83e   : > { %s2306_s9 = smov %s2308_s16  ;;  %24 = sbr.rel (!%p22_p0) target bundleno = 9 (0x9), region = 114 }
 0x845   :  { %1329 = vsyncpa [#allocation5], 1 }
 0x846   :  { %1331 = vsyncpa [#allocation5 + $0x1], 1 }
 0x847   :  { %1332 = vsyncpa [#allocation8], 1 }
 0x848   :  { %1333 = vsyncpa [#allocation6], 1 }
 0x849   :  { %1335 = vsyncpa [#allocation6 + $0x1], 1 }

</bundles_post_ra>
